<compile_context>
chip_gen: v5e
topology: v5e:2x2
jax: 0.10.0
libtpu: 0.0.40
codegen_flags: <defaults>
</compile_context>

<pallas_src>
import functools
import math

import jax
import jax.numpy as jnp
import numpy as np
from jax.experimental import pallas as pl
from jax.experimental.pallas import tpu as pltpu


def _round_up(x, m):
    return (x + m - 1) // m * m


def _cdiv(a, b):
    return -(-a // b)


def _pad2(x, rows, cols):
    r, c = x.shape
    if r == rows and c == cols:
        return x
    return jnp.pad(x, ((0, rows - r), (0, cols - c)))


# ------------------------------ shared step math -------------------------------

def _step_math(z, s, a, w1t, h1, w2a, w2b, h2, *, dh, mean_center, matmul_dtype):
    """One Clipped-shPLRNN step on padded, lane-dense 2-D operands.

    z (B, dzp) f32 (padded lanes exactly zero); a/h2 (1, dzp) f32; h1 (1, dhp) f32
    (already mean-centered by the wrapper if mean_center); w1t (dzp, dhp).
    Packed path (w2b is None): s is (B, dhp) with the real inputs in lanes
    [dh, dh+ds) and w2a is (dhp, dzp) with C^T in rows [dh, dh+ds).
    Fallback path: s is (B, dsp), w2a = W2^T (dhp, dzp), w2b = C^T (dsp, dzp).
    """
    md = matmul_dtype
    f32 = jnp.float32

    # MXU contraction #1 (f32 accumulate)
    wz = jnp.dot(z.astype(md), w1t, preferred_element_type=f32)

    if mean_center:
        # Single XLU reduce.  Padded lanes of Wz are exactly zero (padded W1^T columns
        # are zero), so the lane sum equals the sum over the real dh -> divide by the
        # true dh.  mean(h1) was folded into h1 by the wrapper.
        wz = wz - jnp.sum(wz, axis=1, keepdims=True) * f32(1.0 / dh)

    # clipped-shPLRNN activation; padded lanes are relu(x) - relu(x) == 0 exactly,
    # in BOTH norm modes, so s can safely live in those lanes.
    z_act = jnp.maximum(wz + h1, 0.0) - jnp.maximum(wz, 0.0)     # (B, dhp) f32

    if w2b is None:
        # one VPU add + one K=dhp MXU contraction ([z_act | s] fused without concat)
        lhs = z_act + s.astype(f32)
        rec = jnp.dot(lhs.astype(md), w2a, preferred_element_type=f32)
    else:
        rec = (jnp.dot(z_act.astype(md), w2a, preferred_element_type=f32)
               + jnp.dot(s.astype(md), w2b, preferred_element_type=f32))

    # TODO(synk): noise != 0 path (per-step Gaussian noise) not implemented; it would
    # use pltpu.prng_seed / pltpu.stateful_normal inside the kernel.
    return a * z + rec + h2


def _prepare_params(A, W1, W2, h1, h2, C, *, mean_center, matmul_dtype):
    """Pad / pack the (shared) parameters into lane-dense MXU-ready operands."""
    dz = A.shape[0]
    dh = W1.shape[0]
    ds = C.shape[1]
    dzp, dhp, dsp = (_round_up(d, 128) for d in (dz, dh, ds))
    pack_s = (dh + ds) <= dhp            # s fits in z_act's zero padding lanes

    f32 = jnp.float32
    a_p = _pad2(A.reshape(1, dz).astype(f32), 1, dzp)
    h2_p = _pad2(h2.reshape(1, dz).astype(f32), 1, dzp)
    h1f = h1.astype(f32)
    if mean_center:
        h1f = h1f - jnp.mean(h1f)        # fold mean(h1): only ONE in-kernel reduce
    h1_p = _pad2(h1f.reshape(1, dh), 1, dhp)
    w1t_p = _pad2(W1.T.astype(f32), dzp, dhp).astype(matmul_dtype)
    if pack_s:
        # C^T packed into rows [dh, dh+ds) of the W2^T operand -> single K=dhp dot.
        w2c = jnp.concatenate([W2.T.astype(f32), C.T.astype(f32)], axis=0)
        w2c_p = _pad2(w2c, dhp, dzp).astype(matmul_dtype)
    else:
        w2c_p = jnp.concatenate(
            [_pad2(W2.T.astype(f32), dhp, dzp),
             _pad2(C.T.astype(f32), dsp, dzp)], axis=0).astype(matmul_dtype)
    dims = dict(dz=dz, dh=dh, ds=ds, dzp=dzp, dhp=dhp, dsp=dsp, pack_s=pack_s)
    return (a_p, w1t_p, h1_p, w2c_p, h2_p), dims


# ----------------------------- single step kernel ------------------------------

def _step_kernel(z_ref, s_ref, a_ref, w1t_ref, h1_ref, w2c_ref, h2_ref, out_ref,
                 *, dh, dhp, mean_center, matmul_dtype, pack_s):
    if pack_s:
        w2a, w2b = w2c_ref[...], None
    else:
        w2a, w2b = w2c_ref[:dhp, :], w2c_ref[dhp:, :]
    out_ref[...] = _step_math(
        z_ref[...], s_ref[...], a_ref[...], w1t_ref[...], h1_ref[...],
        w2a, w2b, h2_ref[...],
        dh=dh, mean_center=mean_center, matmul_dtype=matmul_dtype)


@functools.partial(jax.jit,
                   static_argnames=("mean_center", "matmul_dtype", "block_b"))
def clipped_shplrnn_step(z, s, A, W1, W2, h1, h2, C, *,
                         mean_center=False, matmul_dtype=jnp.float32,
                         block_b=512):
    """Pallas implementation of Clipped_shPLRNN_Step.forward (2-D W1/W2 branch)."""
    B, dz = z.shape
    (a_p, w1t_p, h1_p, w2c_p, h2_p), d = _prepare_params(
        A, W1, W2, h1, h2, C, mean_center=mean_center, matmul_dtype=matmul_dtype)
    dzp, dhp, dsp, dh, ds = d["dzp"], d["dhp"], d["dsp"], d["dh"], d["ds"]
    pack_s = d["pack_s"]

    # Adaptive batch tiling: pad only to a multiple of 8, split into roughly equal
    # 8-aligned blocks no larger than block_b (no 2x over-padding for awkward B).
    Bp0 = _round_up(B, 8)
    nb = max(1, _cdiv(Bp0, block_b))
    bB = _round_up(_cdiv(Bp0, nb), 8)
    Bp = nb * bB

    f32 = jnp.float32
    z_p = _pad2(z.astype(f32), Bp, dzp)
    if pack_s:
        s_w = dhp
        s_p = jnp.pad(s, ((0, Bp - B), (dh, dhp - dh - ds))).astype(matmul_dtype)
    else:
        s_w = dsp
        s_p = _pad2(s, Bp, dsp).astype(matmul_dtype)

    kernel = functools.partial(_step_kernel, dh=dh, dhp=dhp,
                               mean_center=mean_center, matmul_dtype=matmul_dtype,
                               pack_s=pack_s)
    const = lambda i: (0, 0)
    w2k = w2c_p.shape[0]
    out = pl.pallas_call(
        kernel,
        out_shape=jax.ShapeDtypeStruct((Bp, dzp), f32),
        grid=(nb,),
        in_specs=[pl.BlockSpec((bB, dzp), lambda i: (i, 0)),     # z
                  pl.BlockSpec((bB, s_w), lambda i: (i, 0)),     # s (packed or plain)
                  pl.BlockSpec((1, dzp), const),                 # A
                  pl.BlockSpec((dzp, dhp), const),               # W1^T
                  pl.BlockSpec((1, dhp), const),                 # h1 (pre-centered)
                  pl.BlockSpec((w2k, dzp), const),               # W2^T [+ C^T packed]
                  pl.BlockSpec((1, dzp), const)],                # h2
        out_specs=pl.BlockSpec((bB, dzp), lambda i: (i, 0)),
        input_output_aliases={0: 0},                             # z buffer -> out
        compiler_params=pltpu.CompilerParams(
            dimension_semantics=("parallel",)),
    )(z_p, s_p, a_p, w1t_p, h1_p, w2c_p, h2_p)
    if Bp == B and dzp == dz:
        return out
    return out[:B, :dz]


# ----------------------- fused T-step rollout kernel ---------------------------

def _rollout_kernel(z0_ref, s_ref, a_ref, w1t_ref, h1_ref, w2c_ref, h2_ref,
                    ztraj_ref, zstate_ref, *, dh, dhp, t_chunk, mean_center,
                    matmul_dtype, pack_s):
    @pl.when(pl.program_id(1) == 0)
    def _():
        zstate_ref[...] = z0_ref[...]

    if pack_s:
        w2a, w2b = w2c_ref[...], None
    else:
        w2a, w2b = w2c_ref[:dhp, :], w2c_ref[dhp:, :]
    a = a_ref[...]
    w1t = w1t_ref[...]
    h1 = h1_ref[...]
    h2 = h2_ref[...]

    z = zstate_ref[...]
    for t in range(t_chunk):     # static unroll: t_chunk steps per grid iteration
        z = _step_math(z, s_ref[t], a, w1t, h1, w2a, w2b, h2,
                       dh=dh, mean_center=mean_center, matmul_dtype=matmul_dtype)
        ztraj_ref[t] = z
    zstate_ref[...] = z


@functools.partial(jax.jit, static_argnames=("mean_center", "matmul_dtype",
                                             "t_chunk", "block_b"))
def clipped_shplrnn_rollout(z0, s_seq, A, W1, W2, h1, h2, C, *,
                            mean_center=False, matmul_dtype=jnp.float32,
                            t_chunk=8, block_b=256):
    """T repeated applications of the forward step inside ONE pallas_call.

    Weights stay VMEM-resident across the rollout (constant index maps), the latent
    state is carried in a VMEM scratch; only s chunks stream in and z chunks stream
    out, t_chunk timesteps per grid iteration.
    """
    T, B, _ = s_seq.shape
    dz = z0.shape[1]
    (a_p, w1t_p, h1_p, w2c_p, h2_p), d = _prepare_params(
        A, W1, W2, h1, h2, C, mean_center=mean_center, matmul_dtype=matmul_dtype)
    dzp, dhp, dsp, dh, ds = d["dzp"], d["dhp"], d["dsp"], d["dh"], d["ds"]
    pack_s = d["pack_s"]

    t_chunk = max(1, min(t_chunk, T))
    Tp = _round_up(T, t_chunk)
    nT = Tp // t_chunk

    # Batch blocks: >=2 whenever padded B >= 16 so both v7x TensorCores are used
    # (harmless on 1-TC chips: weights stay resident, s is not duplicated).
    Bp0 = _round_up(B, 8)
    nb = max(1, _cdiv(Bp0, block_b))
    if Bp0 >= 16:
        nb = max(nb, 2)
    bB = _round_up(_cdiv(Bp0, nb), 8)
    Bp = nb * bB

    f32 = jnp.float32
    z0_p = _pad2(z0.astype(f32), Bp, dzp)
    if pack_s:
        s_w = dhp
        s_p = jnp.pad(s_seq, ((0, Tp - T), (0, Bp - B),
                              (dh, dhp - dh - ds))).astype(matmul_dtype)
    else:
        s_w = dsp
        s_p = jnp.pad(s_seq, ((0, Tp - T), (0, Bp - B),
                              (0, dsp - ds))).astype(matmul_dtype)

    kernel = functools.partial(_rollout_kernel, dh=dh, dhp=dhp, t_chunk=t_chunk,
                               mean_center=mean_center, matmul_dtype=matmul_dtype,
                               pack_s=pack_s)
    const = lambda b, t: (0, 0)
    w2k = w2c_p.shape[0]
    traj = pl.pallas_call(
        kernel,
        out_shape=jax.ShapeDtypeStruct((Tp, Bp, dzp), f32),
        grid=(nb, nT),
        in_specs=[pl.BlockSpec((bB, dzp), lambda b, t: (b, 0)),            # z0
                  pl.BlockSpec((t_chunk, bB, s_w), lambda b, t: (t, b, 0)),  # s chunk
                  pl.BlockSpec((1, dzp), const),                           # A
                  pl.BlockSpec((dzp, dhp), const),                         # W1^T
                  pl.BlockSpec((1, dhp), const),                           # h1
                  pl.BlockSpec((w2k, dzp), const),                         # W2^T[+C^T]
                  pl.BlockSpec((1, dzp), const)],                          # h2
        out_specs=pl.BlockSpec((t_chunk, bB, dzp), lambda b, t: (t, b, 0)),
        scratch_shapes=[pltpu.VMEM((bB, dzp), jnp.float32)],               # carried z
        compiler_params=pltpu.CompilerParams(
            dimension_semantics=("parallel", "arbitrary")),
    )(z0_p, s_p, a_p, w1t_p, h1_p, w2c_p, h2_p)
    # TODO(synk): on v7x (64 MiB VMEM) with large dh, single-buffer the resident
    # weight operands (pipeline_mode=pl.Buffered(1)) and set vmem_limit_bytes.
    if Tp == T and Bp == B and dzp == dz:
        return traj
    return traj[:T, :B, :dz]


# TODO(synk): per-trial 3-D W1/W2 branch (einsum 'ij,ijk->ik') not implemented.


# ------------------------------- references -----------------------------------

def clipped_shplrnn_step_ref(z, s, A, W1, W2, h1, h2, C, mean_center=False):
    hi = jax.lax.Precision.HIGHEST
    norm = ((lambda x: x - x.mean(axis=1, keepdims=True)) if mean_center
            else (lambda x: x))
    wz = jnp.dot(z, W1.T, precision=hi)
    z_act = jax.nn.relu(norm(wz + h1)) - jax.nn.relu(norm(wz))
    return (A * z + jnp.dot(z_act, W2.T, precision=hi) + h2
            + jnp.dot(s, C.T, precision=hi))


def clipped_shplrnn_rollout_ref(z0, s_seq, A, W1, W2, h1, h2, C, mean_center=False):
    def step(z, s):
        z_new = clipped_shplrnn_step_ref(z, s, A, W1, W2, h1, h2, C, mean_center)
        return z_new, z_new
    _, traj = jax.lax.scan(step, z0, s_seq)
    return traj


if __name__ == "__main__":
    # small shapes consistent with the module: batch=8, dz=32, dim_hidden=64, ds=16
    B, dz, dh, ds, T = 8, 32, 64, 16, 12

    key = jax.random.PRNGKey(0)
    k = jax.random.split(key, 8)

    def u(kk, shape):  # init_uniform: U(-1/sqrt(last dim), +1/sqrt(last dim))
        r = 1.0 / math.sqrt(shape[-1])
        return jax.random.uniform(kk, shape, jnp.float32, minval=-r, maxval=r)

    A = jnp.ones((dz,), jnp.float32) * 0.95
    W1 = u(k[0], (dh, dz))
    W2 = u(k[1], (dz, dh))
    h1 = jax.random.normal(k[2], (dh,), jnp.float32)
    h2 = jax.random.normal(k[3], (dz,), jnp.float32)
    C = u(k[4], (dz, ds))
    z = jax.random.normal(k[5], (B, dz), jnp.float32)
    s = jax.random.normal(k[6], (B, ds), jnp.float32)
    s_seq = jax.random.normal(k[7], (T, B, ds), jnp.float32)

    # 1) single step, f32 MXU path
    out = jax.block_until_ready(clipped_shplrnn_step(z, s, A, W1, W2, h1, h2, C))
    ref = clipped_shplrnn_step_ref(z, s, A, W1, W2, h1, h2, C)
    np.testing.assert_allclose(np.asarray(out), np.asarray(ref),
                               rtol=1e-4, atol=1e-4)

    # 1b) single step with mean-centering norm
    out_mc = jax.block_until_ready(
        clipped_shplrnn_step(z, s, A, W1, W2, h1, h2, C, mean_center=True))
    ref_mc = clipped_shplrnn_step_ref(z, s, A, W1, W2, h1, h2, C, mean_center=True)
    np.testing.assert_allclose(np.asarray(out_mc), np.asarray(ref_mc),
                               rtol=1e-4, atol=1e-4)

    # 2) single step, bf16 MXU operands (v6e/v7x recipe), f32 accumulation
    out_bf16 = jax.block_until_ready(
        clipped_shplrnn_step(z, s, A, W1, W2, h1, h2, C,
                             matmul_dtype=jnp.bfloat16))
    np.testing.assert_allclose(np.asarray(out_bf16), np.asarray(ref),
                               rtol=5e-2, atol=5e-2)

    # 3) fused T-step rollout (weights + state VMEM-resident, time-chunked grid)
    traj = jax.block_until_ready(
        clipped_shplrnn_rollout(z, s_seq, A, W1, W2, h1, h2, C))
    traj_ref = clipped_shplrnn_rollout_ref(z, s_seq, A, W1, W2, h1, h2, C)
    np.testing.assert_allclose(np.asarray(traj), np.asarray(traj_ref),
                               rtol=2e-3, atol=2e-3)

    # 3b) rollout with mean-centering norm
    traj_mc = jax.block_until_ready(
        clipped_shplrnn_rollout(z, s_seq, A, W1, W2, h1, h2, C, mean_center=True))
    traj_mc_ref = clipped_shplrnn_rollout_ref(z, s_seq, A, W1, W2, h1, h2, C,
                                              mean_center=True)
    np.testing.assert_allclose(np.asarray(traj_mc), np.asarray(traj_mc_ref),
                               rtol=2e-3, atol=2e-3)

    print("KERNEL_OK")
</pallas_src>

<mosaic_0001>
module attributes {stable_mosaic.version = 11 : i64} {
  func.func @_step_kernel(%arg0: i32, %arg1: memref<8x128xf32, #tpu.memory_space<vmem>>, %arg2: memref<8x128xf32, #tpu.memory_space<vmem>>, %arg3: memref<1x128xf32, #tpu.memory_space<vmem>>, %arg4: memref<128x128xf32, #tpu.memory_space<vmem>>, %arg5: memref<1x128xf32, #tpu.memory_space<vmem>>, %arg6: memref<128x128xf32, #tpu.memory_space<vmem>>, %arg7: memref<1x128xf32, #tpu.memory_space<vmem>>, %arg8: memref<8x128xf32, #tpu.memory_space<vmem>>) attributes {dimension_semantics = [#tpu.dimension_semantics<parallel>], iteration_bounds = array<i64: 1>, scalar_prefetch = 0 : i64, scratch_operands = 0 : i64, tpu.core_type = #tpu.core_type<tc>, window_params = [{transform_indices = @transform_0, window_bounds = array<i64: 8, 128>}, {transform_indices = @transform_1, window_bounds = array<i64: 8, 128>}, {pipeline_mode = #tpu.pipeline_mode<synchronous>, transform_indices = @transform_2, window_bounds = array<i64: 1, 128>}, {pipeline_mode = #tpu.pipeline_mode<synchronous>, transform_indices = @transform_3, window_bounds = array<i64: 128, 128>}, {pipeline_mode = #tpu.pipeline_mode<synchronous>, transform_indices = @transform_4, window_bounds = array<i64: 1, 128>}, {pipeline_mode = #tpu.pipeline_mode<synchronous>, transform_indices = @transform_5, window_bounds = array<i64: 128, 128>}, {pipeline_mode = #tpu.pipeline_mode<synchronous>, transform_indices = @transform_6, window_bounds = array<i64: 1, 128>}, {transform_indices = @transform_7, window_bounds = array<i64: 8, 128>}]} {
    %c0 = arith.constant 0 : index
    %c0_0 = arith.constant 0 : index
    %0 = vector.load %arg6[%c0, %c0_0] : memref<128x128xf32, #tpu.memory_space<vmem>>, vector<128x128xf32>
    %c0_1 = arith.constant 0 : index
    %c0_2 = arith.constant 0 : index
    %1 = vector.load %arg1[%c0_1, %c0_2] : memref<8x128xf32, #tpu.memory_space<vmem>>, vector<8x128xf32>
    %c0_3 = arith.constant 0 : index
    %c0_4 = arith.constant 0 : index
    %2 = vector.load %arg2[%c0_3, %c0_4] : memref<8x128xf32, #tpu.memory_space<vmem>>, vector<8x128xf32>
    %c0_5 = arith.constant 0 : index
    %c0_6 = arith.constant 0 : index
    %3 = vector.load %arg3[%c0_5, %c0_6] : memref<1x128xf32, #tpu.memory_space<vmem>>, vector<1x128xf32>
    %c0_7 = arith.constant 0 : index
    %c0_8 = arith.constant 0 : index
    %4 = vector.load %arg4[%c0_7, %c0_8] : memref<128x128xf32, #tpu.memory_space<vmem>>, vector<128x128xf32>
    %c0_9 = arith.constant 0 : index
    %c0_10 = arith.constant 0 : index
    %5 = vector.load %arg5[%c0_9, %c0_10] : memref<1x128xf32, #tpu.memory_space<vmem>>, vector<1x128xf32>
    %c0_11 = arith.constant 0 : index
    %c0_12 = arith.constant 0 : index
    %6 = vector.load %arg7[%c0_11, %c0_12] : memref<1x128xf32, #tpu.memory_space<vmem>>, vector<1x128xf32>
    %cst = arith.constant dense<0.000000e+00> : vector<8x128xf32>
    %7 = tpu.matmul %1, %4, %cst {dimension_numbers = #tpu.dot_dimension_numbers<[1], [0], [0], [1], [0, 0, 1, 1], [], []>} : vector<8x128xf32>, vector<128x128xf32>, vector<8x128xf32> -> vector<8x128xf32>
    %8 = vector.broadcast %5 : vector<1x128xf32> to vector<8x128xf32>
    %9 = arith.addf %7, %8 : vector<8x128xf32>
    %cst_13 = arith.constant 0.000000e+00 : f32
    %10 = vector.broadcast %cst_13 : f32 to vector<8x128xf32>
    %11 = arith.maximumf %9, %10 : vector<8x128xf32>
    %cst_14 = arith.constant 0.000000e+00 : f32
    %12 = vector.broadcast %cst_14 : f32 to vector<8x128xf32>
    %13 = arith.maximumf %7, %12 : vector<8x128xf32>
    %14 = arith.subf %11, %13 : vector<8x128xf32>
    %15 = arith.addf %14, %2 : vector<8x128xf32>
    %cst_15 = arith.constant dense<0.000000e+00> : vector<8x128xf32>
    %16 = tpu.matmul %15, %0, %cst_15 {dimension_numbers = #tpu.dot_dimension_numbers<[1], [0], [0], [1], [0, 0, 1, 1], [], []>} : vector<8x128xf32>, vector<128x128xf32>, vector<8x128xf32> -> vector<8x128xf32>
    %17 = vector.broadcast %3 : vector<1x128xf32> to vector<8x128xf32>
    %18 = arith.mulf %17, %1 : vector<8x128xf32>
    %19 = arith.addf %18, %16 : vector<8x128xf32>
    %20 = vector.broadcast %6 : vector<1x128xf32> to vector<8x128xf32>
    %21 = arith.addf %19, %20 : vector<8x128xf32>
    %c0_16 = arith.constant 0 : index
    %c0_17 = arith.constant 0 : index
    %22 = vector.load %arg8[%c0_16, %c0_17] : memref<8x128xf32, #tpu.memory_space<vmem>>, vector<8x128xf32>
    tpu.vector_store %arg8[%c0_16, %c0_17], %21 {strides = array<i32>} : memref<8x128xf32, #tpu.memory_space<vmem>>, vector<8x128xf32>,
    return
  }
  func.func @transform_0(%arg0: i32) -> (i32, i32) {
    %c0_i32 = arith.constant 0 : i32
    %c0_i32_0 = arith.constant 0 : i32
    return %arg0, %c0_i32 : i32, i32
  }
  func.func @transform_1(%arg0: i32) -> (i32, i32) {
    %c0_i32 = arith.constant 0 : i32
    %c0_i32_0 = arith.constant 0 : i32
    return %arg0, %c0_i32 : i32, i32
  }
  func.func @transform_2(%arg0: i32) -> (i32, i32) {
    %c0_i32 = arith.constant 0 : i32
    %c0_i32_0 = arith.constant 0 : i32
    %c0_i32_1 = arith.constant 0 : i32
    return %c0_i32, %c0_i32_0 : i32, i32
  }
  func.func @transform_3(%arg0: i32) -> (i32, i32) {
    %c0_i32 = arith.constant 0 : i32
    %c0_i32_0 = arith.constant 0 : i32
    %c0_i32_1 = arith.constant 0 : i32
    return %c0_i32, %c0_i32_0 : i32, i32
  }
  func.func @transform_4(%arg0: i32) -> (i32, i32) {
    %c0_i32 = arith.constant 0 : i32
    %c0_i32_0 = arith.constant 0 : i32
    %c0_i32_1 = arith.constant 0 : i32
    return %c0_i32, %c0_i32_0 : i32, i32
  }
  func.func @transform_5(%arg0: i32) -> (i32, i32) {
    %c0_i32 = arith.constant 0 : i32
    %c0_i32_0 = arith.constant 0 : i32
    %c0_i32_1 = arith.constant 0 : i32
    return %c0_i32, %c0_i32_0 : i32, i32
  }
  func.func @transform_6(%arg0: i32) -> (i32, i32) {
    %c0_i32 = arith.constant 0 : i32
    %c0_i32_0 = arith.constant 0 : i32
    %c0_i32_1 = arith.constant 0 : i32
    return %c0_i32, %c0_i32_0 : i32, i32
  }
  func.func @transform_7(%arg0: i32) -> (i32, i32) {
    %c0_i32 = arith.constant 0 : i32
    %c0_i32_0 = arith.constant 0 : i32
    return %arg0, %c0_i32 : i32, i32
  }
}

</mosaic_0001>

<bundles_post_ra>
// kernel: clipped_shplrnn_step.1
= control target key start
LH: loop header
LB: loop body
LE: loop exit
PB: predicated region body
PF: predicated region fallthrough
CT: control target
= control target key end

     0   :  { %s282_s3 = inlined_call_operand.vmem [shape: f32[128,128], index: 3, kind: input, shape index: {}]   ;;  %s283_s5 = inlined_call_operand.vmem [shape: f32[128,128], index: 5, kind: input, shape index: {}]   ;;  %s284_s4 = inlined_call_operand.vmem [shape: f32[1,128], index: 4, kind: input, shape index: {}]   ;;  %s285_s0 = inlined_call_operand.vmem [shape: f32[8,128], index: 0, kind: input, shape index: {}, may-alias: {0,7}]   ;;  %s286_s2 = inlined_call_operand.vmem [shape: f32[1,128], index: 2, kind: input, shape index: {}]   ;;  %s287_s6 = inlined_call_operand.vmem [shape: f32[1,128], index: 6, kind: input, shape index: {}]   ;;  %s288_s1 = inlined_call_operand.vmem [shape: f32[8,128], index: 1, kind: input, shape index: {}]   ;;  %s289_s7 = inlined_call_operand.vmem [shape: f32[8,128], index: 7, kind: output, shape index: {}, may-alias: {0,7}]  }
   0x1   :  { %v60_v0 = vld [vmem:[%s282_s3 + $0x78] sm:$0xff]  ;;  %v59_v1 = vld [vmem:[%s282_s3 + $0x70] sm:$0xff]  ;;  %v58_v2 = vld [vmem:[%s282_s3 + $0x68] sm:$0xff] }
   0x2   :  { %63 = vmatpush.msra.mxu0 %v60_v0  ;;  %v57_v3 = vld [vmem:[%s282_s3 + $0x60] sm:$0xff]  ;;  %v41_v4 = vld [vmem:[%s283_s5 + $0x78] sm:$0xff]  ;;  %v40_v6 = vld [vmem:[%s283_s5 + $0x70] sm:$0xff] }
   0x3   :  { %v56_v5 = vld [vmem:[%s282_s3 + $0x58] sm:$0xff]  ;;  %91 = vmatpush.msra.mxu1 %v41_v4  ;;  %v39_v7 = vld [vmem:[%s283_s5 + $0x68] sm:$0xff]  ;;  %v55_v8 = vld [vmem:[%s282_s3 + $0x50] sm:$0xff] }
   0x4   :  { %64 = vmatpush.msra.mxu0 %v59_v1  ;;  %v38_v9 = vld [vmem:[%s283_s5 + $0x60] sm:$0xff]  ;;  %v54_v10 = vld [vmem:[%s282_s3 + $0x48] sm:$0xff]  ;;  %v37_v11 = vld [vmem:[%s283_s5 + $0x58] sm:$0xff] }
   0x5   :  { %92 = vmatpush.msra.mxu1 %v40_v6  ;;  %v53_v12 = vld [vmem:[%s282_s3 + $0x40] sm:$0xff]  ;;  %v36_v13 = vld [vmem:[%s283_s5 + $0x50] sm:$0xff]  ;;  %v52_v14 = vld [vmem:[%s282_s3 + $0x38] sm:$0xff] }
   0x6   :  { %65 = vmatpush.msra.mxu0 %v58_v2  ;;  %v35_v15 = vld [vmem:[%s283_s5 + $0x48] sm:$0xff]  ;;  %v51_v16 = vld [vmem:[%s282_s3 + $0x30] sm:$0xff]  ;;  %v34_v17 = vld [vmem:[%s283_s5 + $0x40] sm:$0xff] }
   0x7   :  { %93 = vmatpush.msra.mxu1 %v39_v7  ;;  %v50_v18 = vld [vmem:[%s282_s3 + $0x28] sm:$0xff]  ;;  %v33_v19 = vld [vmem:[%s283_s5 + $0x38] sm:$0xff]  ;;  %v49_v20 = vld [vmem:[%s282_s3 + $0x20] sm:$0xff] }
   0x8   :  { %66 = vmatpush.msra.mxu0 %v57_v3  ;;  %v32_v21 = vld [vmem:[%s283_s5 + $0x30] sm:$0xff]  ;;  %v48_v22 = vld [vmem:[%s282_s3 + $0x18] sm:$0xff]  ;;  %v31_v23 = vld [vmem:[%s283_s5 + $0x28] sm:$0xff] }
   0x9   :  { %94 = vmatpush.msra.mxu1 %v38_v9  ;;  %v47_v24 = vld [vmem:[%s282_s3 + $0x10] sm:$0xff]  ;;  %v46_v25 = vld [vmem:[%s282_s3 + $0x8] sm:$0xff]  ;;  %v45_v26 = vld [vmem:[%s282_s3] sm:$0xff] }
   0xa   :  { %67 = vmatpush.msra.mxu0 %v56_v5  ;;  %v42_v27 = vld [vmem:[%s285_s0] sm:$0xff]  ;;  %v29_v29 = vld [vmem:[%s283_s5 + $0x18] sm:$0xff]  ;;  %v28_v30 = vld [vmem:[%s283_s5 + $0x10] sm:$0xff] }
   0xb   :  { %95 = vmatpush.msra.mxu1 %v37_v11  ;;  %v30_v28 = vld [vmem:[%s283_s5 + $0x20] sm:$0xff]  ;;  %v27_v31 = vld [vmem:[%s283_s5 + $0x8] sm:$0xff] }
   0xc   :  { %68 = vmatpush.msra.mxu0 %v55_v8  ;;  %v26_v32 = vld [vmem:[%s283_s5] sm:$0xff] }
   0xd   :  { %96 = vmatpush.msra.mxu1 %v36_v13  ;;  %v125_v33 = vld [vmem:[%s284_s4] ss:$0 sm:$0xff] }
   0xe   :  { %69 = vmatpush.msra.mxu0 %v54_v10  ;;  %v43_v38 = vld [vmem:[%s288_s1] sm:$0xff] }
   0xf   :  { %97 = vmatpush.msra.mxu1 %v35_v15  ;;  %v126_v41 = vld [vmem:[%s286_s2] ss:$0 sm:$0xff] }
  0x10   :  { %70 = vmatpush.msra.mxu0 %v53_v12  ;;  %v114_v42 = vmul.f32 %v126_v41, %v42_v27  ;;  %v127_v43 = vld [vmem:[%s287_s6] ss:$0 sm:$0xff] }
  0x11   :  { %98 = vmatpush.msra.mxu1 %v34_v17 }
  0x12   :  { %71 = vmatpush.msra.mxu0 %v52_v14 }
  0x13   :  { %99 = vmatpush.msra.mxu1 %v33_v19 }
  0x14   :  { %72 = vmatpush.msra.mxu0 %v51_v16 }
  0x15   :  { %100 = vmatpush.msra.mxu1 %v32_v21 }
  0x16   :  { %73 = vmatpush.msra.mxu0 %v50_v18 }
  0x17   :  { %101 = vmatpush.msra.mxu1 %v31_v23 }
  0x18   :  { %74 = vmatpush.msra.mxu0 %v49_v20 }
  0x19   :  { %102 = vmatpush.msra.mxu1 %v30_v28 }
  0x1a   :  { %75 = vmatpush.msra.mxu0 %v48_v22 }
  0x1b   :  { %103 = vmatpush.msra.mxu1 %v29_v29 }
  0x1c   :  { %76 = vmatpush.msra.mxu0 %v47_v24 }
  0x1d   :  { %104 = vmatpush.msra.mxu1 %v28_v30 }
  0x1e   :  { %77 = vmatpush.msra.mxu0 %v46_v25 }
  0x1f   :  { %105 = vmatpush.msra.mxu1 %v27_v31 }
  0x20   :  { %78 = vmatpush.msra.mxu0 %v45_v26 }
  0x21   :  { %79 = vmatmul.f32.vlgmr.msra.gmra.mxu0 %v42_v27  ;;  %106 = vmatpush.msra.mxu1 %v26_v32 }
  0x9e   :  { %v80_v34 = vpop.f32.mrf.mxu0 }
  0x9f   :  { %v86_v35 = vadd.f32 %v125_v33, %v80_v34  ;;  %v88_v37 = vmax.f32 %v80_v34, 0.0 }
  0xa1   :  { %v87_v36 = vmax.f32 %v86_v35, 0.0 }
  0xa3   :  { %v89_v39 = vsub.f32 %v87_v36, %v88_v37 }
  0xa5   :  { %v90_v40 = vadd.f32 %v89_v39, %v43_v38 }
  0xa7   :  { %107 = vmatmul.f32.vlgmr.msra.gmra.mxu1 %v90_v40 }
 0x124   :  { %v108_v44 = vpop.f32.mrf.mxu1 }
 0x125   :  { %v115_v45 = vadd.f32 %v114_v42, %v108_v44 }
 0x127   :  { %v119_v46 = vadd.f32 %v127_v43, %v115_v45 }
 0x129   :  { %120 = vst [vmem:[%s289_s7] sm:$0xff] %v119_v46 }

</bundles_post_ra>
